<compile_context>
chip_gen: v6e
topology: v6e:2x2x1
jax: 0.10.0
libtpu: 0.0.40
codegen_flags: <defaults>
</compile_context>

<pallas_src>
import functools

import jax
import jax.numpy as jnp
from jax.experimental import pallas as pl
from jax.experimental.pallas import tpu as pltpu


def _round_up(x, m):
    return ((x + m - 1) // m) * m


def _cdiv(a, b):
    return -(-a // b)


def _choose_tile(batch, *, lane=128, max_tile=4096, split_threshold=1024):
    """Pick a lane-aligned batch tile. Forces >=2 grid steps for large batches so
    v7x's two TensorCores both get tiles; keeps padding bounded by one tile."""
    padded_min = _round_up(batch, lane)
    if padded_min <= max(lane, split_threshold):
        tile = padded_min                       # small batch: one lane-dense step
    else:
        n_steps = max(2, _cdiv(padded_min, max_tile))
        tile = _round_up(_cdiv(padded_min, n_steps), lane)
    padded = _round_up(batch, tile)
    return tile, padded


def _qnet_kernel(x_ref, p_ref, o_ref, *, in_dim, hidden, h2):
    """Fused 3-layer MLP in feature-major layout (batch on lanes).

    x_ref: (in_dim, tile)   p_ref: packed param slab   o_ref: (1, tile)
    """
    x = x_ref[...]                                           # (in_dim, tile)

    # --- parameter slab views (all static slices, no transposes needed) -------
    w1t = p_ref[0:hidden, 0:in_dim]                          # (hidden, in_dim) = W1.T
    b1c = p_ref[0:hidden, in_dim:in_dim + 1]                 # (hidden, 1)
    b2c = p_ref[hidden:hidden + h2, hidden:hidden + 1]       # (h2, 1)
    w3c = p_ref[hidden:hidden + h2, hidden + 1:hidden + 2]   # (h2, 1) = W3[:, 0]
    b3 = p_ref[hidden + h2:hidden + h2 + 1, 0:1]             # (1, 1)

    # --- layer 1: single small dot, batch rides the 128-lane axis -------------
    z1 = jnp.dot(w1t, x, preferred_element_type=jnp.float32) + b1c
    h1 = jnp.tanh(z1)                                        # (hidden, tile)

    # --- layer 2 ---------------------------------------------------------------
    if h2 == 1:
        # N=1 matmul collapsed onto VPU broadcast-mul + sublane sum (no MXU pass).
        w2c = p_ref[0:hidden, in_dim + 1:in_dim + 2]         # (hidden, 1) = W2
        z2 = jnp.sum(w2c * h1, axis=0, keepdims=True) + b2c  # (1, tile)
    else:
        # General fallback (hidden >= 20): standard MXU dot with W2.T packed as rows.
        w2t = p_ref[hidden:hidden + h2, 0:hidden]            # (h2, hidden)
        z2 = jnp.dot(w2t, h1, preferred_element_type=jnp.float32) + b2c
    h2a = jnp.tanh(z2)                                       # (h2, tile)

    # --- layer 3: (1, h2) contraction on the VPU + sublane sum ----------------
    out = jnp.sum(w3c * h2a, axis=0, keepdims=True) + b3     # (1, tile)
    o_ref[...] = out.astype(o_ref.dtype)


def q_network_forward(s, a, packed_params, *, state_feats, action_feats, hidden, h2,
                      max_tile=4096, split_threshold=1024):
    """Pallas implementation of Q_Network.forward(s, a).

    packed_params: the slab from pack_params().  Returns (batch, 1) float32.
    """
    batch = s.shape[0]
    in_dim = state_feats + action_feats
    tile, padded = _choose_tile(batch, max_tile=max_tile,
                                split_threshold=split_threshold)

    # Feature-major, fused, lane-dense input: (in_dim, padded), batch on lanes.
    # The concat+transpose is a trivial 32 B/row copy XLA fuses with the producer.
    x = jnp.concatenate((s, a), axis=1).astype(jnp.float32).T   # (in_dim, batch)
    if padded != batch:
        x = jnp.pad(x, ((0, 0), (0, padded - batch)))

    n_rows, n_cols = packed_params.shape
    kernel = functools.partial(_qnet_kernel, in_dim=in_dim, hidden=hidden, h2=h2)

    out = pl.pallas_call(
        kernel,
        out_shape=jax.ShapeDtypeStruct((1, padded), jnp.float32),
        grid=(padded // tile,),
        in_specs=[
            pl.BlockSpec((in_dim, tile), lambda i: (0, i)),
            # constant index_map: the tiny parameter slab stays VMEM-resident
            pl.BlockSpec((n_rows, n_cols), lambda i: (0, 0)),
        ],
        out_specs=pl.BlockSpec((1, tile), lambda i: (0, i)),   # lane-dense output slab
        compiler_params=pltpu.CompilerParams(
            dimension_semantics=("parallel",)),   # batch tiles split across v7x's 2 TCs
    )(x, packed_params)

    return out[0, :batch].reshape(batch, 1)


def pack_params(params, state_feats, action_feats, hidden):
    """Pack (w1, b1, w2, b2, w3, b3) into one small f32 slab (transposed layout).

    Row layout (rows = hidden + h2 + 1, cols = max(in_dim+1+h2, hidden+2)):
      rows [0, hidden):        cols [0, in_dim)            W1.T        (hidden, in_dim)
                               col  in_dim                 b1          (hidden,)
                               cols [in_dim+1, in_dim+1+h2) W2         (hidden, h2)
      rows [hidden, hidden+h2): cols [0, hidden)            W2.T        (h2, hidden)
                               col  hidden                 b2          (h2,)
                               col  hidden+1               W3[:, 0]    (h2,)
      row  hidden+h2:           col  0                      b3
    """
    w1, b1, w2, b2, w3, b3 = params
    in_dim = state_feats + action_feats
    h2 = w2.shape[1]
    rows = hidden + h2 + 1
    cols = max(in_dim + 1 + h2, hidden + 2)
    p = jnp.zeros((rows, cols), jnp.float32)
    p = p.at[0:hidden, 0:in_dim].set(w1.T)
    p = p.at[0:hidden, in_dim].set(b1[0])
    p = p.at[0:hidden, in_dim + 1:in_dim + 1 + h2].set(w2)
    p = p.at[hidden:hidden + h2, 0:hidden].set(w2.T)
    p = p.at[hidden:hidden + h2, hidden].set(b2[0])
    p = p.at[hidden:hidden + h2, hidden + 1].set(w3[:, 0])
    p = p.at[hidden + h2, 0].set(b3[0, 0])
    return p


def init_params(key, state_feats, action_feats, hidden=16):
    """Deterministic init matching the PyTorch module's layer shapes.

    PyTorch Linear(in, out): weight (out, in), bias (out,), uniform(-1/sqrt(in), 1/sqrt(in)).
    We store weights transposed as (in, out) for the x @ W convention.
    """
    h2 = hidden // 10   # Sequential(..., Linear(hidden, hidden // 10), ...)
    if h2 < 1:
        raise ValueError("hidden // 10 must be >= 1 (inherited from the PyTorch model)")
    in_dim = state_feats + action_feats

    def linear(k, fan_in, fan_out):
        kw, kb = jax.random.split(k)
        bound = 1.0 / jnp.sqrt(jnp.float32(fan_in))
        w = jax.random.uniform(kw, (fan_in, fan_out), jnp.float32, -bound, bound)
        b = jax.random.uniform(kb, (1, fan_out), jnp.float32, -bound, bound)
        return w, b

    k1, k2, k3 = jax.random.split(key, 3)
    w1, b1 = linear(k1, in_dim, hidden)   # Linear(in_dim, hidden)
    w2, b2 = linear(k2, hidden, h2)       # Linear(hidden, hidden // 10)
    w3, b3 = linear(k3, h2, 1)            # self.out = Linear(hidden // 10, 1)
    return (w1, b1, w2, b2, w3, b3)


def q_network_ref(s, a, params):
    """Pure-JAX reference for correctness check."""
    w1, b1, w2, b2, w3, b3 = params
    x = jnp.concatenate((s, a), axis=1)
    x = jnp.tanh(x @ w1 + b1)
    x = jnp.tanh(x @ w2 + b2)
    return x @ w3 + b3


if __name__ == "__main__":
    state_feats, action_feats = 4, 4

    key = jax.random.PRNGKey(0)
    kp, ks, ka, ks2, ka2, kp3, ks3, ka3 = jax.random.split(key, 8)

    # --- default model (hidden=16, h2=1): small batch, single grid step ---------
    hidden = 16
    h2 = hidden // 10
    params = init_params(kp, state_feats, action_feats, hidden)
    packed = pack_params(params, state_feats, action_feats, hidden)

    batch = 8
    s = jax.random.normal(ks, (batch, state_feats), jnp.float32)
    a = jax.random.normal(ka, (batch, action_feats), jnp.float32)
    out = q_network_forward(s, a, packed, state_feats=state_feats,
                            action_feats=action_feats, hidden=hidden, h2=h2)
    out = jax.block_until_ready(out)
    ref = q_network_ref(s, a, params)
    assert out.shape == (batch, 1), out.shape
    assert jnp.allclose(out, ref, atol=1e-4, rtol=1e-4), (out, ref)

    # --- ragged batch exercising the multi-tile grid + lane padding -------------
    batch2 = 300
    s2 = jax.random.normal(ks2, (batch2, state_feats), jnp.float32)
    a2 = jax.random.normal(ka2, (batch2, action_feats), jnp.float32)
    out2 = q_network_forward(s2, a2, packed, state_feats=state_feats,
                             action_feats=action_feats, hidden=hidden, h2=h2,
                             max_tile=256, split_threshold=128)   # -> 2 grid steps
    out2 = jax.block_until_ready(out2)
    ref2 = q_network_ref(s2, a2, params)
    assert out2.shape == (batch2, 1), out2.shape
    assert jnp.allclose(out2, ref2, atol=1e-4, rtol=1e-4), (out2, ref2)

    # --- hidden=32 (h2=3): exercises the general h2 > 1 MXU fallback ------------
    hidden3 = 32
    h2_3 = hidden3 // 10
    params3 = init_params(kp3, state_feats, action_feats, hidden3)
    packed3 = pack_params(params3, state_feats, action_feats, hidden3)
    batch3 = 17
    s3 = jax.random.normal(ks3, (batch3, state_feats), jnp.float32)
    a3 = jax.random.normal(ka3, (batch3, action_feats), jnp.float32)
    out3 = q_network_forward(s3, a3, packed3, state_feats=state_feats,
                             action_feats=action_feats, hidden=hidden3, h2=h2_3)
    out3 = jax.block_until_ready(out3)
    ref3 = q_network_ref(s3, a3, params3)
    assert out3.shape == (batch3, 1), out3.shape
    assert jnp.allclose(out3, ref3, atol=1e-4, rtol=1e-4), (out3, ref3)

    print("KERNEL_OK")
</pallas_src>

<mosaic_0001>
module attributes {stable_mosaic.version = 11 : i64} {
  func.func @_qnet_kernel(%arg0: i32, %arg1: memref<8x128xf32, #tpu.memory_space<vmem>>, %arg2: memref<18x18xf32, #tpu.memory_space<vmem>>, %arg3: memref<1x128xf32, #tpu.memory_space<vmem>>) attributes {dimension_semantics = [#tpu.dimension_semantics<parallel>], iteration_bounds = array<i64: 1>, scalar_prefetch = 0 : i64, scratch_operands = 0 : i64, tpu.core_type = #tpu.core_type<tc>, window_params = [{transform_indices = @transform_0, window_bounds = array<i64: 8, 128>}, {pipeline_mode = #tpu.pipeline_mode<synchronous>, transform_indices = @transform_1, window_bounds = array<i64: 18, 18>}, {transform_indices = @transform_2, window_bounds = array<i64: 1, 128>}]} {
    %c0 = arith.constant 0 : index
    %c0_0 = arith.constant 0 : index
    %0 = vector.load %arg1[%c0, %c0_0] : memref<8x128xf32, #tpu.memory_space<vmem>>, vector<8x128xf32>
    %c0_1 = arith.constant 0 : index
    %c0_2 = arith.constant 0 : index
    %1 = vector.load %arg2[%c0_1, %c0_2] : memref<18x18xf32, #tpu.memory_space<vmem>>, vector<16x8xf32>
    %c0_3 = arith.constant 0 : index
    %c8 = arith.constant 8 : index
    %2 = vector.load %arg2[%c0_3, %c8] : memref<18x18xf32, #tpu.memory_space<vmem>>, vector<16x1xf32>
    %c16 = arith.constant 16 : index
    %c16_4 = arith.constant 16 : index
    %3 = vector.load %arg2[%c16, %c16_4] : memref<18x18xf32, #tpu.memory_space<vmem>>, vector<1x1xf32>
    %c16_5 = arith.constant 16 : index
    %c17 = arith.constant 17 : index
    %4 = vector.load %arg2[%c16_5, %c17] : memref<18x18xf32, #tpu.memory_space<vmem>>, vector<1x1xf32>
    %c17_6 = arith.constant 17 : index
    %c0_7 = arith.constant 0 : index
    %5 = vector.load %arg2[%c17_6, %c0_7] : memref<18x18xf32, #tpu.memory_space<vmem>>, vector<1x1xf32>
    %cst = arith.constant dense<0.000000e+00> : vector<16x128xf32>
    %6 = tpu.matmul %1, %0, %cst {dimension_numbers = #tpu.dot_dimension_numbers<[1], [0], [0], [1], [0, 0, 1, 1], [], []>} : vector<16x8xf32>, vector<8x128xf32>, vector<16x128xf32> -> vector<16x128xf32>
    %7 = vector.broadcast %2 : vector<16x1xf32> to vector<16x128xf32>
    %8 = arith.addf %6, %7 : vector<16x128xf32>
    %9 = math.tanh %8 : vector<16x128xf32>
    %c0_8 = arith.constant 0 : index
    %c9 = arith.constant 9 : index
    %10 = vector.load %arg2[%c0_8, %c9] : memref<18x18xf32, #tpu.memory_space<vmem>>, vector<16x1xf32>
    %11 = vector.broadcast %10 : vector<16x1xf32> to vector<16x128xf32>
    %12 = arith.mulf %11, %9 : vector<16x128xf32>
    %cst_9 = arith.constant dense<0.000000e+00> : vector<128xf32>
    %13 = vector.multi_reduction <add>, %12, %cst_9 [0] : vector<16x128xf32> to vector<128xf32>
    %14 = vector.shape_cast %13 : vector<128xf32> to vector<1x128xf32>
    %15 = vector.broadcast %3 : vector<1x1xf32> to vector<1x128xf32>
    %16 = arith.addf %14, %15 : vector<1x128xf32>
    %17 = math.tanh %16 : vector<1x128xf32>
    %18 = vector.broadcast %4 : vector<1x1xf32> to vector<1x128xf32>
    %19 = arith.mulf %18, %17 : vector<1x128xf32>
    %cst_10 = arith.constant dense<0.000000e+00> : vector<128xf32>
    %20 = vector.multi_reduction <add>, %19, %cst_10 [0] : vector<1x128xf32> to vector<128xf32>
    %21 = vector.shape_cast %20 : vector<128xf32> to vector<1x128xf32>
    %22 = vector.broadcast %5 : vector<1x1xf32> to vector<1x128xf32>
    %23 = arith.addf %21, %22 : vector<1x128xf32>
    %c0_11 = arith.constant 0 : index
    %c0_12 = arith.constant 0 : index
    %24 = vector.load %arg3[%c0_11, %c0_12] : memref<1x128xf32, #tpu.memory_space<vmem>>, vector<1x128xf32>
    tpu.vector_store %arg3[%c0_11, %c0_12], %23 {strides = array<i32>} : memref<1x128xf32, #tpu.memory_space<vmem>>, vector<1x128xf32>,
    return
  }
  func.func @transform_0(%arg0: i32) -> (i32, i32) {
    %c0_i32 = arith.constant 0 : i32
    %c0_i32_0 = arith.constant 0 : i32
    return %c0_i32, %arg0 : i32, i32
  }
  func.func @transform_1(%arg0: i32) -> (i32, i32) {
    %c0_i32 = arith.constant 0 : i32
    %c0_i32_0 = arith.constant 0 : i32
    %c0_i32_1 = arith.constant 0 : i32
    return %c0_i32, %c0_i32_0 : i32, i32
  }
  func.func @transform_2(%arg0: i32) -> (i32, i32) {
    %c0_i32 = arith.constant 0 : i32
    %c0_i32_0 = arith.constant 0 : i32
    return %c0_i32, %arg0 : i32, i32
  }
}

</mosaic_0001>

<bundles_post_ra>
// kernel: tpu_custom_call.1
= control target key start
LH: loop header
LB: loop body
LE: loop exit
PB: predicated region body
PF: predicated region fallthrough
CT: control target
= control target key end

     0   :  { %7 = vsyncpa [#allocation3], 0  ;;  %s320_s0 = inlined_call_operand.hbm [shape: f32[8,128], index: 0, kind: input, shape index: {}]   ;;  %s321_s1 = inlined_call_operand.hbm [shape: f32[18,18], index: 1, kind: input, shape index: {}]   ;;  %s322_s2 = inlined_call_operand.hbm [shape: f32[1,128], index: 2, kind: output, shape index: {}]  }
   0x1   :  { %8 = vsyncpa [#allocation6], 0 }
   0x2   :  { %9 = vsyncpa [#allocation4], 0  ;;  %s286_s9 = smov [#allocation2]   ;;  %s287_s11 = smov [#allocation5]  }
   0x3   :  { %s16_s10 = sshll.u32 %s286_s9, 4  ;;  %s25_s12 = sshll.u32 %s287_s11, 4  ;;  %s17_s10 = int_to_ptr.vmem [resolvable:$true] %s16_s10  ;;  %s26_s12 = int_to_ptr.vmem [resolvable:$true] %s25_s12 }
   0x4   :  { %s228_s13 = scalar_lea.vmem %s17_s10, 128  ;;  %p233_p1 = scmp.lt.s32.totalorder %s17_s10, %s17_s10 }
   0x5   :  { %p229_p0 = scmp.ne.s32.totalorder %s17_s10, %s228_s13  ;;  %p234_p2 = scmp.lt.s32.totalorder %s228_s13, %s228_s13 }
   0x7   :  { %p235_p3 = por %p234_p2, %p233_p1 }
   0x9   :  { %p236_p4 = pnand %p235_p3, %p229_p0 }
   0xb   :  { %239 = shalt.err (!%p236_p4)
}
   0xc   :  { %19 = dma.hbm_to_vmem [thread:$0]  %s320_s0, 128, %s17_s10, [#allocation3]  }
   0xd   :  { %s248_s16 = scalar_lea.vmem %s26_s12, 384  ;;  %p253_p6 = scmp.lt.s32.totalorder %s26_s12, %s26_s12 }
   0xe   :  { %p249_p5 = scmp.ne.s32.totalorder %s26_s12, %s248_s16  ;;  %p254_p7 = scmp.lt.s32.totalorder %s248_s16, %s248_s16 }
  0x10   :  { %p255_p8 = por %p254_p7, %p253_p6 }
  0x12   :  { %p256_p9 = pnand %p255_p8, %p249_p5 }
  0x14   :  { %259 = shalt.err (!%p256_p9)
}
  0x15   :  { %s288_s17 = smov 128   ;;  %s289_s18 = smov 8  }
  0x16   :  { %31 = dma.hbm_to_vmem [thread:$0]  %s321_s1, 384, %s26_s12, [#allocation6], %s288_s17, %s288_s17, %s289_s18  }
  0x17   :  { %280 = dma.done.wait [#allocation3], 128  }
  0x18   :  { %281 = vsyncadd [#allocation3], 4294967168 }
  0x19   :  { %282 = dma.done.wait [#allocation6], 384  }
  0x1a   :  { %283 = vsyncadd [#allocation6], 4294966912  ;;  %v290_v0 = vmov 8   ;;  %v291_v1 = vmov 9   ;;  %vm53_vm0 = vcmask 64512   ;;  %v38_v2 = vld [vmem:[#allocation2] sm:$0xff] }
  0x1b   :  { %208 = vset.pattern.permute.xlu0 %v290_v0  ;;  %209 = vset.pattern.permute.xlu1 %v291_v1  ;;  %v39_v3 = vld [vmem:[#allocation5] sm:$0xff]  ;;  %v40_v4 = vld [vmem:[#allocation5 + $0x8] sm:$0xff]  ;;  %v41_v5 = vld [vmem:[#allocation5 + $0x10] sm:$0x1]  ;;  %v292_v6 = vmov 16   ;;  %v293_v7 = vmov 17  }
  0x1c   :  { %193 = vmatprep.subr.mxu0 %v38_v2  ;;  %195 = vmatprep.mubr.msk.f32.mxu0 %vm53_vm0, %v39_v3  ;;  %v42_v8 = vld [vmem:[#allocation5 + $0x11] sm:$0x1]  ;;  %v294_v9 = vmov 0   ;;  %s295_s0 = smov [#allocation7]  }
  0x1d   :  { %194 = vmatpush3.msra.mxu0 %v38_v2  ;;  %45 = vperm.xlu0 %208, %v39_v3   ;;  %s178_s1 = sshll.u32 %s295_s0, 4  ;;  %s179_s1 = int_to_ptr.vmem [resolvable:$true] %s178_s1 }
  0x1e   :  { %196 = vmatmul.mubr.msk.f32.vlgmr.msra.gmra.mxu0 %vm53_vm0, %v40_v4  ;;  %136 = vperm.xlu1 %209, %v39_v3   ;;  %s260_s21 = scalar_lea.vmem %s179_s1, 16  ;;  %s264_s22 = scalar_lea.vmem %s179_s1, 32 }
  0x1f   :  { %p261_p10 = scmp.ne.s32.totalorder %s179_s1, %s260_s21  ;;  %p265_p11 = scmp.lt.s32.totalorder %s179_s1, %s179_s1 }
  0x20   :  { %p266_p12 = scmp.lt.s32.totalorder %s264_s22, %s260_s21 }
  0x21   :  { %50 = vperm.xlu0 %208, %v40_v4  }
  0x22   :  { %140 = vperm.xlu1 %209, %v40_v4   ;;  %p267_p13 = por %p266_p12, %p265_p11 }
  0x24   :  { %p268_p0 = pnand %p267_p13, %p261_p10 }
  0x25   :  { %210 = vset.pattern.permute.xlu0 %v292_v6 }
  0x26   :  { %154 = vperm.xlu0 %210, %v41_v5   ;;  %211 = vset.pattern.permute.xlu1 %v293_v7 }
  0x27   :  { %160 = vperm.xlu1 %211, %v41_v5  }
  0x2a   :  { %213 = vset.pattern.permute.xlu0 %v294_v9 }
  0x2b   :  { %212 = vset.pattern.permute.xlu1 %v294_v9 }
  0x2c   :  { %167 = vperm.xlu1 %212, %v42_v8  }
  0x98   :  { %v46_v10 = vpop.permute.xlu0 %45 }
  0x99   :  { %v137_v16 = vpop.permute.xlu1 %136 }
  0x9c   :  { %v51_v11 = vpop.permute.xlu0 %50 }
  0x9d   :  { %v141_v19 = vpop.permute.xlu1 %140 }
  0xa1   :  { %v155_v28 = vpop.permute.xlu0 %154 }
  0xa2   :  { %v161_v31 = vpop.permute.xlu1 %160 }
  0xa7   :  { %v168_v33 = vpop.permute.xlu1 %167 }
  0xde   :  { %v197_v12 = vpop.f32.mrf.mxu0 }
  0xdf   :  { %v130_v13 = vadd.f32 %v197_v12, %v51_v11 }
  0xe0   :  { %v124_v14 = vpop.f32.mrf.mxu0 }
  0xe1   :  { %214 = vtanh.f32 %v130_v13  ;;  %v125_v15 = vadd.f32 %v124_v14, %v46_v10 }
  0xe3   :  { %216 = vtanh.f32 %v125_v15 }
  0xee   :  { %v215_v17 = vpop.eup %214 }
  0xef   :  { %v144_v21 = vmul.f32 %v215_v17, %v141_v19 }
  0xf0   :  { %v217_v18 = vpop.eup %216 }
  0xf1   :  { %v143_v20 = vmul.f32 %v217_v18, %v137_v16 }
  0xf3   :  { %v145_v22 = vadd.f32 %v144_v21, %v143_v20 }
  0xf5   :  { %v146_v23 = vrot.slane %v145_v22, 4 }
  0xf7   :  { %v147_v24 = vadd.f32 %v146_v23, %v145_v22 }
  0xf9   :  { %v148_v25 = vrot.slane %v147_v24, 2 }
  0xfb   :  { %v149_v26 = vadd.f32 %v148_v25, %v147_v24 }
  0xfd   :  { %v150_v27 = vrot.slane %v149_v26, 1 }
  0xff   :  { %v151_v29 = vadd.f32 %v150_v27, %v149_v26 }
 0x101   :  { %v157_v30 = vadd.f32 %v155_v28, %v151_v29 }
 0x103   :  { %218 = vtanh.f32 %v157_v30 }
 0x110   :  { %v219_v32 = vpop.eup %218 }
 0x111   :  { %v163_v34 = vmul.f32 %v219_v32, %v161_v31 }
 0x113   :  { %v170_v35 = vadd.f32 %v168_v33, %v163_v34 }
 0x115   :  { %171 = vst [vmem:[#allocation7] sm:$0x1] %v170_v35 }
 0x116   :  { %271 = shalt.err (!%p268_p0)
}
 0x117   :  { %181 = dma.vmem_to_hbm [thread:$0]  %s179_s1, 16, %s322_s2, [#allocation4]  }
 0x118   :  { %284 = dma.done.wait [#allocation4], 16  }
 0x119   :  { %285 = vsyncadd [#allocation4], 4294967280 }
 0x11a   :  { %185 = vsyncpa [#allocation3], 1 }
 0x11b   :  { %186 = vsyncpa [#allocation6], 1 }
 0x11c   :  { %187 = vsyncpa [#allocation4], 1 }

</bundles_post_ra>
